<compile_context>
chip_gen: v6e
topology: v6e:2x2x1
jax: 0.10.0
libtpu: 0.0.40
codegen_flags: <defaults>
</compile_context>

<pallas_src>
import functools

import jax
import jax.numpy as jnp
import numpy as np
from jax.experimental import pallas as pl
from jax.experimental.pallas import tpu as pltpu

_SELU_ALPHA = 1.6732632423543772
_SELU_SCALE = 1.0507009873554805


def _selu_unscaled(x):
  """SELU without the 1.0507 scale (scale is folded into downstream weights).

  Overflow-safe: exp only ever sees non-positive arguments.
  """
  neg = _SELU_ALPHA * (jnp.exp(jnp.minimum(x, 0.0)) - 1.0)
  return jnp.where(x > 0.0, x, neg)


# ----------------------------------------------------------------------------
# Pallas kernel: one grid step == NB images fused on the lane axis (C, NB*H*W)
# ----------------------------------------------------------------------------
def _sn_squeeze_kernel(x_ref, m_ref, w1_ref, w2_ref, w3_ref, w4_ref, w5_ref,
                       o_ref, *, W):
  L = x_ref.shape[1]                       # NB * H * W  (lane axis)
  mk = m_ref[...]                          # (4, L) 0/1 boundary masks
  m_hm1, m_hp1, m_wm1, m_wp1 = mk[0:1], mk[1:2], mk[2:3], mk[3:4]

  def mm(w, a):                            # (Co, Ci) @ (Ci, L) -> (Co, L)
    return jnp.dot(w, a, preferred_element_type=jnp.float32)

  x = x_ref[...]                           # (Cin, L), lane-dense
  y = _selu_unscaled(mm(w1_ref[...], x))   # 1x1: Cin  -> Cin//2
  y = _selu_unscaled(mm(w2_ref[...], y))   # 1x1: ..   -> Cin//4

  # (3,1) conv, padding (1,0): shift along H == lane-roll by +/- W.
  w3 = w3_ref[...]                         # (3, Cm, C2): taps h-1, h, h+1
  y_hm1 = pltpu.roll(y, shift=W, axis=1) * m_hm1        # x[h-1, w]
  y_hp1 = pltpu.roll(y, shift=L - W, axis=1) * m_hp1    # x[h+1, w]
  y = _selu_unscaled(mm(w3[0], y_hm1) + mm(w3[1], y) + mm(w3[2], y_hp1))

  # (1,3) conv, padding (0,1): shift along W == lane-roll by +/- 1.
  w4 = w4_ref[...]                         # (3, Cm, Cm): taps w-1, w, w+1
  y_wm1 = pltpu.roll(y, shift=1, axis=1) * m_wm1         # x[h, w-1]
  y_wp1 = pltpu.roll(y, shift=L - 1, axis=1) * m_wp1     # x[h, w+1]
  y = _selu_unscaled(mm(w4[0], y_wm1) + mm(w4[1], y) + mm(w4[2], y_wp1))

  # Final 1x1 -> Cout; the only place the SELU scale is applied explicitly.
  o_ref[...] = _SELU_SCALE * _selu_unscaled(mm(w5_ref[...], y))
  # TODO(synk): for production-size H*W on v7x (64 MiB VMEM), block the lane
  #             axis into H-row bands with a 1-row halo instead of whole
  #             images, keeping tiles in the multi-MiB sweet spot.


# ----------------------------------------------------------------------------
# Wrapper
# ----------------------------------------------------------------------------
def _const_spec(arr):
  nd = arr.ndim
  return pl.BlockSpec(arr.shape, lambda b, _nd=nd: (0,) * _nd)


@jax.jit
def self_normalizing_squeeze_block(x_nchw, params):
  """Forward pass.  x_nchw: (N, Cin, H, W) float32 -> (N, Cout, H, W)."""
  x = x_nchw.astype(jnp.float32)
  N, Cin, H, W = x.shape
  M = H * W
  Cout = params["w5"].shape[0]

  # --- batch block size: amortize the ~0.35 us per-grid-step overhead, stay
  #     inside a per-generation VMEM budget, keep >=2 grid steps (megacore).
  vmem_cap = 128 << 20
  try:
    vmem_cap = int(getattr(pltpu.get_tpu_info(), "vmem_capacity_bytes",
                           vmem_cap))
  except Exception:
    pass
  io_budget = max(4 << 20, min(vmem_cap // 4, 32 << 20))
  per_img_io = 2 * 4 * M * (Cin + Cout)        # double-buffered x + o blocks
  nb = max(1, min(N, io_budget // max(1, per_img_io)))
  if N >= 2:
    nb = min(nb, max(1, N // 2))               # >=2 steps -> both v7x TCs busy
  while N % nb:
    nb -= 1
  L = nb * M

  # NCHW -> (Cin, N*H*W): channels on sublanes, pixels lane-dense.  The
  # transpose is done once by XLA outside the kernel; inside, every matmul
  # output is an unmasked lane-dense store.
  x_cl = jnp.transpose(x.reshape(N, Cin, M), (1, 0, 2)).reshape(Cin, N * M)

  # Periodic boundary masks for the rolled shifts (built once at trace time).
  # They also zero exactly the lanes where a roll would bleed across images.
  lane = np.arange(L)
  lm = lane % M
  col = lm % W
  masks = jnp.asarray(np.stack([
      lm >= W,            # h-1 valid
      lm < M - W,         # h+1 valid
      col >= 1,           # w-1 valid
      col < W - 1,        # w+1 valid
  ]).astype(np.float32))                       # (4, L)

  # Fold the SELU scale into downstream weights (conv is linear); only the
  # final activation applies the scale inside the kernel.
  scale = jnp.float32(_SELU_SCALE)
  weights = [params["w1"],
             params["w2"] * scale,
             params["w3"] * scale,
             params["w4"] * scale,
             params["w5"] * scale]

  kernel = functools.partial(_sn_squeeze_kernel, W=W)

  in_specs = [pl.BlockSpec((Cin, L), lambda b: (0, b)),
              _const_spec(masks)]
  in_specs += [_const_spec(w) for w in weights]

  out = pl.pallas_call(
      kernel,
      grid=(N // nb,),
      in_specs=in_specs,
      out_specs=pl.BlockSpec((Cout, L), lambda b: (0, b)),
      out_shape=jax.ShapeDtypeStruct((Cout, N * M), jnp.float32),
      compiler_params=pltpu.CompilerParams(
          dimension_semantics=("parallel",),
          vmem_limit_bytes=int(min(vmem_cap * 3 // 4, 100 << 20))),
  )(x_cl, masks, *weights)

  return jnp.transpose(out.reshape(Cout, N, M),
                       (1, 0, 2)).reshape(N, Cout, H, W)


# ----------------------------------------------------------------------------
# Deterministic parameter init (mirrors the torch module's conv shapes/init;
# note: every conv in the torch block is bias=False, so no biases here either)
# ----------------------------------------------------------------------------
def init_params(key, cin, cout):
  c1 = int(cin * 0.5)
  c2 = int(cin * 0.25)
  cm = int(cin * 0.5)
  keys = jax.random.split(key, 5)

  def conv_w(k, fan_in, shape):
    # kaiming_normal_(fan_in, nonlinearity='linear') -> std = 1/sqrt(fan_in)
    return (jax.random.normal(k, shape, jnp.float32)
            * np.float32(np.sqrt(1.0 / fan_in)))

  return {
      "w1": conv_w(keys[0], cin * 1 * 1, (c1, cin)),       # 1x1
      "w2": conv_w(keys[1], c1 * 1 * 1, (c2, c1)),         # 1x1
      "w3": conv_w(keys[2], c2 * 3 * 1, (3, cm, c2)),      # (3,1) taps h-1,h,h+1
      "w4": conv_w(keys[3], cm * 1 * 3, (3, cm, cm)),      # (1,3) taps w-1,w,w+1
      "w5": conv_w(keys[4], cm * 1 * 1, (cout, cm)),       # 1x1
  }


# ----------------------------------------------------------------------------
# Pure-JAX reference (independent code path) for verification
# ----------------------------------------------------------------------------
def ref_forward(x_nchw, params):
  x = jnp.transpose(x_nchw, (0, 2, 3, 1))   # NHWC

  def pw(x, w):                              # w: (Cout, Cin)
    return jax.nn.selu(jnp.einsum("nhwc,dc->nhwd", x, w))

  def conv3(x, w, axis):                     # w: (3, Cout, Cin)
    rhs = jnp.transpose(w, (0, 2, 1))        # (3, Cin, Cout)
    if axis == 1:                            # (3,1) kernel, padding (1,0)
      rhs = rhs[:, None, :, :]               # HWIO
      pad = ((1, 1), (0, 0))
    else:                                    # (1,3) kernel, padding (0,1)
      rhs = rhs[None, :, :, :]
      pad = ((0, 0), (1, 1))
    y = jax.lax.conv_general_dilated(
        x, rhs, (1, 1), pad,
        dimension_numbers=("NHWC", "HWIO", "NHWC"))
    return jax.nn.selu(y)

  y = pw(x, params["w1"])
  y = pw(y, params["w2"])
  y = conv3(y, params["w3"], axis=1)
  y = conv3(y, params["w4"], axis=2)
  y = pw(y, params["w5"])
  return jnp.transpose(y, (0, 3, 1, 2))      # back to NCHW


# ----------------------------------------------------------------------------
if __name__ == "__main__":
  key = jax.random.PRNGKey(0)
  kx, kp = jax.random.split(key)

  N, Cin, H, W = 2, 16, 16, 16
  Cout = 32

  x = jax.random.normal(kx, (N, Cin, H, W), jnp.float32)   # NCHW like torch
  params = init_params(kp, Cin, Cout)

  out = jax.block_until_ready(self_normalizing_squeeze_block(x, params))
  ref = jax.block_until_ready(ref_forward(x, params))

  np.testing.assert_allclose(np.asarray(out), np.asarray(ref),
                             rtol=2e-3, atol=2e-3)
  assert out.shape == (N, Cout, H, W) and out.dtype == jnp.float32

  print("KERNEL_OK")
</pallas_src>

<mosaic_0001>
module attributes {stable_mosaic.version = 11 : i64} {
  func.func @_sn_squeeze_kernel(%arg0: i32, %arg1: memref<16x256xf32, #tpu.memory_space<vmem>>, %arg2: memref<4x256xf32, #tpu.memory_space<vmem>>, %arg3: memref<8x16xf32, #tpu.memory_space<vmem>>, %arg4: memref<4x8xf32, #tpu.memory_space<vmem>>, %arg5: memref<3x8x4xf32, #tpu.memory_space<vmem>>, %arg6: memref<3x8x8xf32, #tpu.memory_space<vmem>>, %arg7: memref<32x8xf32, #tpu.memory_space<vmem>>, %arg8: memref<32x256xf32, #tpu.memory_space<vmem>>) attributes {dimension_semantics = [#tpu.dimension_semantics<parallel>], iteration_bounds = array<i64: 2>, scalar_prefetch = 0 : i64, scratch_operands = 0 : i64, tpu.core_type = #tpu.core_type<tc>, window_params = [{transform_indices = @transform_0, window_bounds = array<i64: 16, 256>}, {pipeline_mode = #tpu.pipeline_mode<synchronous>, transform_indices = @transform_1, window_bounds = array<i64: 4, 256>}, {pipeline_mode = #tpu.pipeline_mode<synchronous>, transform_indices = @transform_2, window_bounds = array<i64: 8, 16>}, {pipeline_mode = #tpu.pipeline_mode<synchronous>, transform_indices = @transform_3, window_bounds = array<i64: 4, 8>}, {pipeline_mode = #tpu.pipeline_mode<synchronous>, transform_indices = @transform_4, window_bounds = array<i64: 3, 8, 4>}, {pipeline_mode = #tpu.pipeline_mode<synchronous>, transform_indices = @transform_5, window_bounds = array<i64: 3, 8, 8>}, {pipeline_mode = #tpu.pipeline_mode<synchronous>, transform_indices = @transform_6, window_bounds = array<i64: 32, 8>}, {transform_indices = @transform_7, window_bounds = array<i64: 32, 256>}]} {
    %c0 = arith.constant 0 : index
    %c0_0 = arith.constant 0 : index
    %0 = vector.load %arg2[%c0, %c0_0] : memref<4x256xf32, #tpu.memory_space<vmem>>, vector<4x256xf32>
    %1 = vector.extract_strided_slice %0 {offsets = [0, 0], sizes = [1, 256], strides = [1, 1]} : vector<4x256xf32> to vector<1x256xf32>
    %2 = vector.extract_strided_slice %0 {offsets = [1, 0], sizes = [1, 256], strides = [1, 1]} : vector<4x256xf32> to vector<1x256xf32>
    %3 = vector.extract_strided_slice %0 {offsets = [2, 0], sizes = [1, 256], strides = [1, 1]} : vector<4x256xf32> to vector<1x256xf32>
    %4 = vector.extract_strided_slice %0 {offsets = [3, 0], sizes = [1, 256], strides = [1, 1]} : vector<4x256xf32> to vector<1x256xf32>
    %c0_1 = arith.constant 0 : index
    %c0_2 = arith.constant 0 : index
    %5 = vector.load %arg1[%c0_1, %c0_2] : memref<16x256xf32, #tpu.memory_space<vmem>>, vector<16x256xf32>
    %c0_3 = arith.constant 0 : index
    %c0_4 = arith.constant 0 : index
    %6 = vector.load %arg3[%c0_3, %c0_4] : memref<8x16xf32, #tpu.memory_space<vmem>>, vector<8x16xf32>
    %cst = arith.constant dense<0.000000e+00> : vector<8x256xf32>
    %7 = tpu.matmul %6, %5, %cst {dimension_numbers = #tpu.dot_dimension_numbers<[1], [0], [0], [1], [0, 0, 1, 1], [], []>} : vector<8x16xf32>, vector<16x256xf32>, vector<8x256xf32> -> vector<8x256xf32>
    %cst_5 = arith.constant 0.000000e+00 : f32
    %8 = vector.broadcast %cst_5 : f32 to vector<8x256xf32>
    %9 = arith.minimumf %7, %8 : vector<8x256xf32>
    %10 = math.exp %9 : vector<8x256xf32>
    %cst_6 = arith.constant 1.000000e+00 : f32
    %11 = vector.broadcast %cst_6 : f32 to vector<8x256xf32>
    %12 = arith.subf %10, %11 : vector<8x256xf32>
    %cst_7 = arith.constant 1.67326319 : f32
    %13 = vector.broadcast %cst_7 : f32 to vector<8x256xf32>
    %14 = arith.mulf %13, %12 : vector<8x256xf32>
    %cst_8 = arith.constant 0.000000e+00 : f32
    %15 = vector.broadcast %cst_8 : f32 to vector<8x256xf32>
    %16 = arith.cmpf ogt, %7, %15 : vector<8x256xf32>
    %17 = arith.select %16, %7, %14 : vector<8x256xi1>, vector<8x256xf32>
    %c0_9 = arith.constant 0 : index
    %c0_10 = arith.constant 0 : index
    %18 = vector.load %arg4[%c0_9, %c0_10] : memref<4x8xf32, #tpu.memory_space<vmem>>, vector<4x8xf32>
    %cst_11 = arith.constant dense<0.000000e+00> : vector<4x256xf32>
    %19 = tpu.matmul %18, %17, %cst_11 {dimension_numbers = #tpu.dot_dimension_numbers<[1], [0], [0], [1], [0, 0, 1, 1], [], []>} : vector<4x8xf32>, vector<8x256xf32>, vector<4x256xf32> -> vector<4x256xf32>
    %cst_12 = arith.constant 0.000000e+00 : f32
    %20 = vector.broadcast %cst_12 : f32 to vector<4x256xf32>
    %21 = arith.minimumf %19, %20 : vector<4x256xf32>
    %22 = math.exp %21 : vector<4x256xf32>
    %cst_13 = arith.constant 1.000000e+00 : f32
    %23 = vector.broadcast %cst_13 : f32 to vector<4x256xf32>
    %24 = arith.subf %22, %23 : vector<4x256xf32>
    %cst_14 = arith.constant 1.67326319 : f32
    %25 = vector.broadcast %cst_14 : f32 to vector<4x256xf32>
    %26 = arith.mulf %25, %24 : vector<4x256xf32>
    %cst_15 = arith.constant 0.000000e+00 : f32
    %27 = vector.broadcast %cst_15 : f32 to vector<4x256xf32>
    %28 = arith.cmpf ogt, %19, %27 : vector<4x256xf32>
    %29 = arith.select %28, %19, %26 : vector<4x256xi1>, vector<4x256xf32>
    %c0_16 = arith.constant 0 : index
    %c0_17 = arith.constant 0 : index
    %c0_18 = arith.constant 0 : index
    %30 = vector.load %arg5[%c0_16, %c0_17, %c0_18] : memref<3x8x4xf32, #tpu.memory_space<vmem>>, vector<3x8x4xf32>
    %c16_i32 = arith.constant 16 : i32
    %31 = tpu.dynamic_rotate %29 by %c16_i32 dim 1 : vector<4x256xf32>, i32 -> vector<4x256xf32>
    %32 = vector.broadcast %1 : vector<1x256xf32> to vector<4x256xf32>
    %33 = arith.mulf %31, %32 : vector<4x256xf32>
    %c240_i32 = arith.constant 240 : i32
    %34 = tpu.dynamic_rotate %29 by %c240_i32 dim 1 : vector<4x256xf32>, i32 -> vector<4x256xf32>
    %35 = vector.broadcast %2 : vector<1x256xf32> to vector<4x256xf32>
    %36 = arith.mulf %34, %35 : vector<4x256xf32>
    %37 = vector.extract_strided_slice %30 {offsets = [0, 0, 0], sizes = [1, 8, 4], strides = [1, 1, 1]} : vector<3x8x4xf32> to vector<1x8x4xf32>
    %38 = vector.shape_cast %37 : vector<1x8x4xf32> to vector<8x4xf32>
    %cst_19 = arith.constant dense<0.000000e+00> : vector<8x256xf32>
    %39 = tpu.matmul %38, %33, %cst_19 {dimension_numbers = #tpu.dot_dimension_numbers<[1], [0], [0], [1], [0, 0, 1, 1], [], []>} : vector<8x4xf32>, vector<4x256xf32>, vector<8x256xf32> -> vector<8x256xf32>
    %40 = vector.extract_strided_slice %30 {offsets = [1, 0, 0], sizes = [1, 8, 4], strides = [1, 1, 1]} : vector<3x8x4xf32> to vector<1x8x4xf32>
    %41 = vector.shape_cast %40 : vector<1x8x4xf32> to vector<8x4xf32>
    %cst_20 = arith.constant dense<0.000000e+00> : vector<8x256xf32>
    %42 = tpu.matmul %41, %29, %cst_20 {dimension_numbers = #tpu.dot_dimension_numbers<[1], [0], [0], [1], [0, 0, 1, 1], [], []>} : vector<8x4xf32>, vector<4x256xf32>, vector<8x256xf32> -> vector<8x256xf32>
    %43 = arith.addf %39, %42 : vector<8x256xf32>
    %44 = vector.extract_strided_slice %30 {offsets = [2, 0, 0], sizes = [1, 8, 4], strides = [1, 1, 1]} : vector<3x8x4xf32> to vector<1x8x4xf32>
    %45 = vector.shape_cast %44 : vector<1x8x4xf32> to vector<8x4xf32>
    %cst_21 = arith.constant dense<0.000000e+00> : vector<8x256xf32>
    %46 = tpu.matmul %45, %36, %cst_21 {dimension_numbers = #tpu.dot_dimension_numbers<[1], [0], [0], [1], [0, 0, 1, 1], [], []>} : vector<8x4xf32>, vector<4x256xf32>, vector<8x256xf32> -> vector<8x256xf32>
    %47 = arith.addf %43, %46 : vector<8x256xf32>
    %cst_22 = arith.constant 0.000000e+00 : f32
    %48 = vector.broadcast %cst_22 : f32 to vector<8x256xf32>
    %49 = arith.minimumf %47, %48 : vector<8x256xf32>
    %50 = math.exp %49 : vector<8x256xf32>
    %cst_23 = arith.constant 1.000000e+00 : f32
    %51 = vector.broadcast %cst_23 : f32 to vector<8x256xf32>
    %52 = arith.subf %50, %51 : vector<8x256xf32>
    %cst_24 = arith.constant 1.67326319 : f32
    %53 = vector.broadcast %cst_24 : f32 to vector<8x256xf32>
    %54 = arith.mulf %53, %52 : vector<8x256xf32>
    %cst_25 = arith.constant 0.000000e+00 : f32
    %55 = vector.broadcast %cst_25 : f32 to vector<8x256xf32>
    %56 = arith.cmpf ogt, %47, %55 : vector<8x256xf32>
    %57 = arith.select %56, %47, %54 : vector<8x256xi1>, vector<8x256xf32>
    %c0_26 = arith.constant 0 : index
    %c0_27 = arith.constant 0 : index
    %c0_28 = arith.constant 0 : index
    %58 = vector.load %arg6[%c0_26, %c0_27, %c0_28] : memref<3x8x8xf32, #tpu.memory_space<vmem>>, vector<3x8x8xf32>
    %c1_i32 = arith.constant 1 : i32
    %59 = tpu.dynamic_rotate %57 by %c1_i32 dim 1 : vector<8x256xf32>, i32 -> vector<8x256xf32>
    %60 = vector.broadcast %3 : vector<1x256xf32> to vector<8x256xf32>
    %61 = arith.mulf %59, %60 : vector<8x256xf32>
    %c255_i32 = arith.constant 255 : i32
    %62 = tpu.dynamic_rotate %57 by %c255_i32 dim 1 : vector<8x256xf32>, i32 -> vector<8x256xf32>
    %63 = vector.broadcast %4 : vector<1x256xf32> to vector<8x256xf32>
    %64 = arith.mulf %62, %63 : vector<8x256xf32>
    %65 = vector.extract_strided_slice %58 {offsets = [0, 0, 0], sizes = [1, 8, 8], strides = [1, 1, 1]} : vector<3x8x8xf32> to vector<1x8x8xf32>
    %66 = vector.shape_cast %65 : vector<1x8x8xf32> to vector<8x8xf32>
    %cst_29 = arith.constant dense<0.000000e+00> : vector<8x256xf32>
    %67 = tpu.matmul %66, %61, %cst_29 {dimension_numbers = #tpu.dot_dimension_numbers<[1], [0], [0], [1], [0, 0, 1, 1], [], []>} : vector<8x8xf32>, vector<8x256xf32>, vector<8x256xf32> -> vector<8x256xf32>
    %68 = vector.extract_strided_slice %58 {offsets = [1, 0, 0], sizes = [1, 8, 8], strides = [1, 1, 1]} : vector<3x8x8xf32> to vector<1x8x8xf32>
    %69 = vector.shape_cast %68 : vector<1x8x8xf32> to vector<8x8xf32>
    %cst_30 = arith.constant dense<0.000000e+00> : vector<8x256xf32>
    %70 = tpu.matmul %69, %57, %cst_30 {dimension_numbers = #tpu.dot_dimension_numbers<[1], [0], [0], [1], [0, 0, 1, 1], [], []>} : vector<8x8xf32>, vector<8x256xf32>, vector<8x256xf32> -> vector<8x256xf32>
    %71 = arith.addf %67, %70 : vector<8x256xf32>
    %72 = vector.extract_strided_slice %58 {offsets = [2, 0, 0], sizes = [1, 8, 8], strides = [1, 1, 1]} : vector<3x8x8xf32> to vector<1x8x8xf32>
    %73 = vector.shape_cast %72 : vector<1x8x8xf32> to vector<8x8xf32>
    %cst_31 = arith.constant dense<0.000000e+00> : vector<8x256xf32>
    %74 = tpu.matmul %73, %64, %cst_31 {dimension_numbers = #tpu.dot_dimension_numbers<[1], [0], [0], [1], [0, 0, 1, 1], [], []>} : vector<8x8xf32>, vector<8x256xf32>, vector<8x256xf32> -> vector<8x256xf32>
    %75 = arith.addf %71, %74 : vector<8x256xf32>
    %cst_32 = arith.constant 0.000000e+00 : f32
    %76 = vector.broadcast %cst_32 : f32 to vector<8x256xf32>
    %77 = arith.minimumf %75, %76 : vector<8x256xf32>
    %78 = math.exp %77 : vector<8x256xf32>
    %cst_33 = arith.constant 1.000000e+00 : f32
    %79 = vector.broadcast %cst_33 : f32 to vector<8x256xf32>
    %80 = arith.subf %78, %79 : vector<8x256xf32>
    %cst_34 = arith.constant 1.67326319 : f32
    %81 = vector.broadcast %cst_34 : f32 to vector<8x256xf32>
    %82 = arith.mulf %81, %80 : vector<8x256xf32>
    %cst_35 = arith.constant 0.000000e+00 : f32
    %83 = vector.broadcast %cst_35 : f32 to vector<8x256xf32>
    %84 = arith.cmpf ogt, %75, %83 : vector<8x256xf32>
    %85 = arith.select %84, %75, %82 : vector<8x256xi1>, vector<8x256xf32>
    %c0_36 = arith.constant 0 : index
    %c0_37 = arith.constant 0 : index
    %86 = vector.load %arg7[%c0_36, %c0_37] : memref<32x8xf32, #tpu.memory_space<vmem>>, vector<32x8xf32>
    %cst_38 = arith.constant dense<0.000000e+00> : vector<32x256xf32>
    %87 = tpu.matmul %86, %85, %cst_38 {dimension_numbers = #tpu.dot_dimension_numbers<[1], [0], [0], [1], [0, 0, 1, 1], [], []>} : vector<32x8xf32>, vector<8x256xf32>, vector<32x256xf32> -> vector<32x256xf32>
    %cst_39 = arith.constant 0.000000e+00 : f32
    %88 = vector.broadcast %cst_39 : f32 to vector<32x256xf32>
    %89 = arith.minimumf %87, %88 : vector<32x256xf32>
    %90 = math.exp %89 : vector<32x256xf32>
    %cst_40 = arith.constant 1.000000e+00 : f32
    %91 = vector.broadcast %cst_40 : f32 to vector<32x256xf32>
    %92 = arith.subf %90, %91 : vector<32x256xf32>
    %cst_41 = arith.constant 1.67326319 : f32
    %93 = vector.broadcast %cst_41 : f32 to vector<32x256xf32>
    %94 = arith.mulf %93, %92 : vector<32x256xf32>
    %cst_42 = arith.constant 0.000000e+00 : f32
    %95 = vector.broadcast %cst_42 : f32 to vector<32x256xf32>
    %96 = arith.cmpf ogt, %87, %95 : vector<32x256xf32>
    %97 = arith.select %96, %87, %94 : vector<32x256xi1>, vector<32x256xf32>
    %cst_43 = arith.constant 1.05070102 : f32
    %98 = vector.broadcast %cst_43 : f32 to vector<32x256xf32>
    %99 = arith.mulf %98, %97 : vector<32x256xf32>
    %c0_44 = arith.constant 0 : index
    %c0_45 = arith.constant 0 : index
    %100 = vector.load %arg8[%c0_44, %c0_45] : memref<32x256xf32, #tpu.memory_space<vmem>>, vector<32x256xf32>
    tpu.vector_store %arg8[%c0_44, %c0_45], %99 {strides = array<i32>} : memref<32x256xf32, #tpu.memory_space<vmem>>, vector<32x256xf32>,
    return
  }
  func.func @transform_0(%arg0: i32) -> (i32, i32) {
    %c0_i32 = arith.constant 0 : i32
    %c0_i32_0 = arith.constant 0 : i32
    return %c0_i32, %arg0 : i32, i32
  }
  func.func @transform_1(%arg0: i32) -> (i32, i32) {
    %c0_i32 = arith.constant 0 : i32
    %c0_i32_0 = arith.constant 0 : i32
    %c0_i32_1 = arith.constant 0 : i32
    return %c0_i32, %c0_i32_0 : i32, i32
  }
  func.func @transform_2(%arg0: i32) -> (i32, i32) {
    %c0_i32 = arith.constant 0 : i32
    %c0_i32_0 = arith.constant 0 : i32
    %c0_i32_1 = arith.constant 0 : i32
    return %c0_i32, %c0_i32_0 : i32, i32
  }
  func.func @transform_3(%arg0: i32) -> (i32, i32) {
    %c0_i32 = arith.constant 0 : i32
    %c0_i32_0 = arith.constant 0 : i32
    %c0_i32_1 = arith.constant 0 : i32
    return %c0_i32, %c0_i32_0 : i32, i32
  }
  func.func @transform_4(%arg0: i32) -> (i32, i32, i32) {
    %c0_i32 = arith.constant 0 : i32
    %c0_i32_0 = arith.constant 0 : i32
    %c0_i32_1 = arith.constant 0 : i32
    %c0_i32_2 = arith.constant 0 : i32
    return %c0_i32, %c0_i32_0, %c0_i32_1 : i32, i32, i32
  }
  func.func @transform_5(%arg0: i32) -> (i32, i32, i32) {
    %c0_i32 = arith.constant 0 : i32
    %c0_i32_0 = arith.constant 0 : i32
    %c0_i32_1 = arith.constant 0 : i32
    %c0_i32_2 = arith.constant 0 : i32
    return %c0_i32, %c0_i32_0, %c0_i32_1 : i32, i32, i32
  }
  func.func @transform_6(%arg0: i32) -> (i32, i32) {
    %c0_i32 = arith.constant 0 : i32
    %c0_i32_0 = arith.constant 0 : i32
    %c0_i32_1 = arith.constant 0 : i32
    return %c0_i32, %c0_i32_0 : i32, i32
  }
  func.func @transform_7(%arg0: i32) -> (i32, i32) {
    %c0_i32 = arith.constant 0 : i32
    %c0_i32_0 = arith.constant 0 : i32
    return %c0_i32, %arg0 : i32, i32
  }
}

</mosaic_0001>

<bundles_post_ra>
// kernel: self_normalizing_squeeze_block.1
= control target key start
LH: loop header
LB: loop body
LE: loop exit
PB: predicated region body
PF: predicated region fallthrough
CT: control target
= control target key end

     0   :  { %s1554_s24 = smov 0   ;;  %s1556_s25 = smov 0   ;;  %s1730_s0 = inlined_call_operand.vmem [shape: f32[16,512], index: 0, kind: input, shape index: {}]   ;;  %s1731_s1 = inlined_call_operand.vmem [shape: f32[4,256], index: 1, kind: input, shape index: {}]   ;;  %s1732_s2 = inlined_call_operand.vmem [shape: f32[8,16], index: 2, kind: input, shape index: {}]   ;;  %s1733_s3 = inlined_call_operand.vmem [shape: f32[4,8], index: 3, kind: input, shape index: {}]   ;;  %s1734_s4 = inlined_call_operand.vmem [shape: f32[3,8,4], index: 4, kind: input, shape index: {}]   ;;  %s1735_s5 = inlined_call_operand.vmem [shape: f32[3,8,8], index: 5, kind: input, shape index: {}]   ;;  %s1736_s6 = inlined_call_operand.vmem [shape: f32[32,8], index: 6, kind: input, shape index: {}]   ;;  %s1737_s7 = inlined_call_operand.vmem [shape: f32[32,512], index: 7, kind: output, shape index: {}]  }
   0x1   :  { %s1558_s26 = smov 0  }
   0x2 LB: > { %s1373_s27 = sadd.s32 4294967295, %s1507_s26   ;;  %s1571_s28 = sadd.s32 1, %s1507_s26   ;;  %s1507_s26 = sphi %s1558_s26, %s1741_s26   ;;  %s1503_s25 = sphi %s1556_s25, %s1740_s25   ;;  %s1499_s24 = sphi %s1554_s24, %s1739_s24  }
   0x3   : > { %s21_s29 = ssub.s32 %s1507_s26, %s1571_s28  ;;  %s24_s30 = sadd.s32 1, %s1503_s25 }
   0x4   : > { %p22_p0 = scmp.eq.s32.totalorder %s21_s29, 0  ;;  %p31_p1 = scmp.ne.s32.totalorder %s1503_s25, %s1499_s24 }
   0x5   : > { %p32_p2 = scmp.eq.s32.totalorder %s1507_s26, 0  ;;  %p187_p3 = scmp.eq.s32.totalorder %s1373_s27, 1 }
   0x6   : > { %s1582_s8 = scalar_select %p22_p0, %s1503_s25, %s24_s30  }
   0x7   : > { %p33_p4 = por %p32_p2, %p31_p1  ;;  %p1584_p5 = por %p187_p3, %p31_p1 }
   0x8   : > { %p1376_p6 = scmp.ge.s32.totalorder %s1507_s26, 2 }
   0xa   : > { %227 = sbr.rel (%p1376_p6) target bundleno = 21 (0x15), region = 40 }
   0xf   : > { %230 = sbr.rel (!%p33_p4) target bundleno = 21 (0x15), region = 44  ;;  %s232_s10 = sand.u32 (%p33_p4), 1, %s1503_s25  }
  0x10   : > { %s1422_s11 = sshll.u32 (%p33_p4), %s1507_s26, 4  ;;  %s1377_s12 = sshll.u32 (%p33_p4), %s232_s10, 5 }
  0x11   : > { %s237_s15 = scalar_lea.vmem (%p33_p4), %s1730_s0, %s1422_s11  ;;  %s234_s16 = scalar_lea.vmem (%p33_p4), [#allocation2], %s1377_s12 }
  0x12   : > { %v250_v0 = vld [vmem:[%s237_s15] sm:$0xff] (%p33_p4)  ;;  %v252_v1 = vld [vmem:[%s237_s15 + $0x8] sm:$0xff] (%p33_p4) }
  0x13   : > { %v254_v2 = vld [vmem:[%s237_s15 + $0x20] sm:$0xff] (%p33_p4)  ;;  %251 = vst [vmem:[%s234_s16] sm:$0xff] (%p33_p4), %v250_v0  ;;  %253 = vst [vmem:[%s234_s16 + $0x8] sm:$0xff] (%p33_p4), %v252_v1  ;;  %v256_v3 = vld [vmem:[%s237_s15 + $0x28] sm:$0xff] (%p33_p4) }
  0x14   : > { %255 = vst [vmem:[%s234_s16 + $0x10] sm:$0xff] %v254_v2  ;;  %257 = vst [vmem:[%s234_s16 + $0x18] sm:$0xff] %v256_v3 }
  0x15 PF: > { %p1380_p7 = scmp.ge.s32.totalorder %s1507_s26, 1  ;;  %p262_p8 = scmp.lt.s32.totalorder %s1507_s26, 3 }
  0x17   : > { %p263_p9 = pnand %p1380_p7, %p262_p8 }
  0x18   : > { %s269_s17 = sand.u32 (!%p263_p9), 1, %s1499_s24   ;;  %s1510_s29 = smov (!%p263_p9), 112  }
  0x19   : > { %266 = sbr.rel (%p263_p9) target bundleno = 1405 (0x57d), region = 67  ;;  %s1381_s18 = sshll.u32 (!%p263_p9), %s269_s17, 5 }
  0x1a   : > { %s271_s19 = scalar_lea.vmem (!%p263_p9), [#allocation2], %s1381_s18  ;;  %s1511_s30 = smov (!%p263_p9), 16  }
  0x1b   : > { %s1513_s22 = smov (!%p263_p9), 127   ;;  %s1382_s20 = sshll.u32 (!%p263_p9), %s269_s17, 6 }
  0x1c   : > { %s1695_s21 = scalar_lea.vmem (!%p263_p9), [#allocation3], %s1382_s20 }
  0x1e   : > { %v1509_v4 = vmov 0.0   ;;  %v305_v5 = vld [vmem:[%s271_s19 + $0x18] sm:$0xff]  ;;  %v304_v6 = vld [vmem:[%s271_s19 + $0x10] sm:$0xff]  ;;  %v303_v7 = vld [vmem:[%s271_s19 + $0x8] sm:$0xff]  ;;  %vm307_vm0 = vcmask 130048   ;;  %vm397_vm3 = vcmask 64512   ;;  %v493_v40 = vlaneseq }
  0x1f   : > { %375 = vmatprep.mubr.f32.mxu0 %v1509_v4  ;;  %781 = vmatprep.mubr.f32.mxu1 %v1509_v4  ;;  %v302_v8 = vld [vmem:[%s271_s19] sm:$0xff]  ;;  %vm550_vm5 = vcmask 1043456   ;;  %v487_v39 = vld [vmem:[%s1734_s4 + $0x8] sm:$0xff]  ;;  %vm546_vm7 = vcmask 31744   ;;  %s1512_s19 = smov 1   ;;  %s1423_s24 = sshll.u32 (%p1584_p5), %s1373_s27, 4 }
  0x20   : > { %339 = vmatprep.subr.mxu0 %v305_v5  ;;  %v306_v9 = vld [vmem:[%s1732_s2] sm:$0xff]  ;;  %v1617_v41 = vshrl.u32 %v493_v40, 7  ;;  %v1628_v47 = vand.u32 127, %v493_v40  ;;  %s1285_s23 = scalar_lea.vmem (%p1584_p5), %s1737_s7, %s1423_s24 }
  0x21   : > { %340 = vmatpush1.msra.mxu0 %v304_v6  ;;  %v396_v23 = vld [vmem:[%s1733_s3] sm:$0xf]  ;;  %v488_v6 = vld [vmem:[%s1734_s4 + $0x10] sm:$0xff] }
  0x22   : > { %341 = vmatprep.subr.mxu0 %v303_v7  ;;  %v528_v42 = vsub.s32 1, %v1617_v41  ;;  %v1623_v43 = vld [vmem:[%s1731_s1] sm:$0xff]  ;;  %v501_v44 = vsub.s32 0, %v1617_v41  ;;  %v505_v45 = vsub.s32 4, %v1617_v41  ;;  %v532_v46 = vsub.s32 5, %v1617_v41 }
  0x23   : > { %342 = vmatpush1.msra.mxu0 %v302_v8  ;;  %vm523_vm8 = vcmp.lt.s32.totalorder %v1628_v47, 112  ;;  %vm495_vm9 = vcmp.lt.s32.totalorder %v1628_v47, 16  ;;  %v486_v5 = vld [vmem:[%s1734_s4] sm:$0xff]  ;;  %vm811_vm12 = vcmp.lt.s32.totalorder %v1628_v47, 1  ;;  %vm838_vm13 = vcmp.lt.s32.totalorder %v1628_v47, 127  ;;  %v806_v47 = vld [vmem:[%s1735_s5 + $0x10] sm:$0xff] }
  0x24   : > { %1383 = vmatmul.mubr.msk.f32.vlgmr.msra.gmra.mxu0 %vm307_vm0, %v306_v9  ;;  %v529_v48 = vrot.slane %v1623_v43, %v528_v42  ;;  %v502_v49 = vrot.slane %v1623_v43, %v501_v44  ;;  %v506_v50 = vrot.slane %v1623_v43, %v505_v45  ;;  %v533_v51 = vrot.slane %v1623_v43, %v532_v46 }
  0x25   : > { %465 = vmatprep.mubr.f32.mxu0 %v1509_v4 }
  0x26   : > { %v539_v54 = vrot.slane %v529_v48, %v528_v42  ;;  %v512_v55 = vrot.slane %v502_v49, %v501_v44  ;;  %v516_v56 = vrot.slane %v506_v50, %v501_v44  ;;  %v543_v57 = vrot.slane %v533_v51, %v528_v42 }
  0xe4   : > { %v377_v10 = vpop.f32.mrf.mxu0 }
  0xe5   : > { %v382_v11 = vmin.f32 %v377_v10, 0.0  ;;  %vm392_vm2 = vcmp.gt.f32.partialorder %v377_v10, 0.0 }
  0xe6   : > { %v379_v12 = vpop.f32.mrf.mxu0 }
  0xe7   : > { %v384_v13 = vmul.f32 1.442695, %v382_v11  ;;  %v383_v14 = vmin.f32 %v379_v12, 0.0  ;;  %vm393_vm1 = vcmp.gt.f32.partialorder %v379_v12, 0.0 }
  0xe9   : > { %1453 = vpow2.f32 %v384_v13  ;;  %v386_v15 = vmul.f32 1.442695, %v383_v14 }
  0xeb   : > { %1455 = vpow2.f32 %v386_v15 }
  0xf6   : > { %v1454_v16 = vpop.eup %1453 }
  0xf7   : > { %v1384_v17 = vadd.f32 -1.0, %v1454_v16 }
  0xf8   : > { %v1456_v18 = vpop.eup %1455 }
  0xf9   : > { %v1385_v19 = vadd.f32 -1.0, %v1456_v18  ;;  %v390_v20 = vmul.f32 1.6732632, %v1384_v17 }
  0xfb   : > { %v391_v21 = vmul.f32 1.6732632, %v1385_v19  ;;  %v394_v24 = vsel %vm392_vm2, %v377_v10, %v390_v20 }
  0xfd   : > { %v395_v22 = vsel %vm393_vm1, %v379_v12, %v391_v21 }
  0xfe   : > { %431 = vmatprep.subr.mxu0 %v395_v22 }
  0xff   : > { %432 = vmatpush1.msra.mxu0 %v394_v24 }
 0x100   : > { %1386 = vmatmul.mubr.msk.f32.vlgmr.msra.gmra.mxu0 %vm397_vm3, %v396_v23 }
 0x101   : > { %621 = vmatprep.mubr.f32.mxu0 %v1509_v4 }
 0x1c0   : > { %v467_v25 = vpop.f32.mrf.mxu0 }
 0x1c1   : > { %v472_v26 = vmin.f32 %v467_v25, 0.0  ;;  %vm482_vm4 = vcmp.gt.f32.partialorder %v467_v25, 0.0 }
 0x1c2   : > { %v469_v27 = vpop.f32.mrf.mxu0 }
 0x1c3   : > { %v474_v28 = vmul.f32 1.442695, %v472_v26  ;;  %v473_v29 = vmin.f32 %v469_v27, 0.0  ;;  %vm483_vm6 = vcmp.gt.f32.partialorder %v469_v27, 0.0 }
 0x1c5   : > { %1457 = vpow2.f32 %v474_v28  ;;  %v476_v30 = vmul.f32 1.442695, %v473_v29  ;;  %v805_v29 = vld [vmem:[%s1735_s5 + $0x8] sm:$0xff] }
 0x1c7   : > { %1459 = vpow2.f32 %v476_v30  ;;  %v816_v30 = vsub.s32 2, %v1617_v41 }
 0x1d2   : > { %v1458_v31 = vpop.eup %1457 }
 0x1d3   : > { %v1387_v32 = vadd.f32 -1.0, %v1458_v31  ;;  %v820_v31 = vsub.s32 6, %v1617_v41 }
 0x1d4   : > { %v1460_v33 = vpop.eup %1459 }
 0x1d5   : > { %v1388_v34 = vadd.f32 -1.0, %v1460_v33  ;;  %v480_v35 = vmul.f32 1.6732632, %v1387_v32  ;;  %v817_v32 = vrot.slane %v1623_v43, %v816_v30  ;;  %v821_v33 = vrot.slane %v1623_v43, %v820_v31 }
 0x1d7   : > { %v484_v36 = vsel %vm482_vm4, %v467_v25, %v480_v35  ;;  %v481_v37 = vmul.f32 1.6732632, %v1388_v34  ;;  %v843_v34 = vsub.s32 3, %v1617_v41  ;;  %v847_v35 = vsub.s32 7, %v1617_v41  ;;  %v804_v41 = vld [vmem:[%s1735_s5] sm:$0xff] }
 0x1d8   : > { %519 = vrot.lane.b32.xlu1 %v484_v36, %s1510_s29  ;;  %489 = vrot.lane.b32.xlu0 %v484_v36, %s1511_s30 }
 0x1d9   : > { %v485_v38 = vsel %vm483_vm6, %v469_v27, %v481_v37  ;;  %v827_v37 = vrot.slane %v817_v32, %v816_v30  ;;  %v848_v40 = vrot.slane %v1623_v43, %v847_v35 }
 0x1da   : > { %1389 = vmatprep.subr.msk.mxu0 %vm550_vm5, %v485_v38 }
 0x1db   : > { %1390 = vmatpush1.msk.msra.mxu0 %vm550_vm5, %v484_v36  ;;  %v858_v50 = vrot.slane %v848_v40, %v843_v34 }
 0x1dc   : > { %521 = vrot.lane.b32.xlu1 %v485_v38, %s1510_s29  ;;  %491 = vrot.lane.b32.xlu0 %v485_v38, %s1511_s30  ;;  %v831_v38 = vrot.slane %v821_v33, %v816_v30 }
 0x1dd   : > { %1391 = vmatmul.mubr.msk.f32.vlgmr.msra.gmra.mxu0 %vm546_vm7, %v487_v39  ;;  %v844_v39 = vrot.slane %v1623_v43, %v843_v34 }
 0x1de   : > { %701 = vmatprep.mubr.f32.mxu0 %v1509_v4 }
 0x1df   : > { %v854_v49 = vrot.slane %v844_v39, %v843_v34 }
 0x24a   : > { %v520_v52 = vpop.permute.xlu1 %519  ;;  %v490_v53 = vpop.permute.xlu0 %489 }
 0x24e   : > { %v522_v58 = vpop.permute.xlu1 %521  ;;  %v492_v59 = vpop.permute.xlu0 %491 }
 0x24f   : > { %v524_v60 = vsel %vm523_vm8, %v520_v52, %v522_v58  ;;  %v525_v61 = vsel %vm523_vm8, %v522_v58, %v520_v52  ;;  %v496_v62 = vsel %vm495_vm9, %v490_v53, %v492_v59  ;;  %v497_v63 = vsel %vm495_vm9, %v492_v59, %v490_v53 }
 0x250   : > { %v544_v0 = vmul.f32 %v539_v54, %v524_v60  ;;  %v517_v1 = vmul.f32 %v512_v55, %v497_v63  ;;  %v518_v2 = vmul.f32 %v516_v56, %v496_v62  ;;  %v545_v3 = vmul.f32 %v543_v57, %v525_v61 }
 0x252   : > { %1392 = vmatprep.subr.msk.mxu0 %vm550_vm5, %v518_v2  ;;  %1395 = vmatprep.subr.msk.mxu1 %vm550_vm5, %v545_v3 }
 0x253   : > { %1393 = vmatpush1.msk.msra.mxu0 %vm550_vm5, %v517_v1  ;;  %1396 = vmatpush1.msk.msra.mxu1 %vm550_vm5, %v544_v0 }
 0x254   : > { %1394 = vmatmul.mubr.msk.f32.vlgmr.msra.gmra.mxu0 %vm546_vm7, %v486_v5  ;;  %1397 = vmatmul.mubr.msk.f32.vlgmr.msra.gmra.mxu1 %vm546_vm7, %v488_v6 }
 0x255   : > { %928 = vmatprep.mubr.f32.mxu0 %v1509_v4  ;;  %1002 = vmatprep.mubr.f32.mxu1 %v1509_v4 }
 0x29d   : > { %v623_v7 = vpop.f32.mrf.mxu0 }
 0x29f   : > { %v625_v8 = vpop.f32.mrf.mxu0 }
 0x314   : > { %v703_v9 = vpop.f32.mrf.mxu0  ;;  %v783_v10 = vpop.f32.mrf.mxu1 }
 0x315   : > { %v704_v11 = vadd.f32 %v703_v9, %v623_v7 }
 0x316   : > { %v705_v12 = vpop.f32.mrf.mxu0  ;;  %v785_v15 = vpop.f32.mrf.mxu1 }
 0x317   : > { %v788_v13 = vadd.f32 %v783_v10, %v704_v11  ;;  %v706_v14 = vadd.f32 %v705_v12, %v625_v8 }
 0x319   : > { %v790_v16 = vmin.f32 %v788_v13, 0.0  ;;  %v789_v17 = vadd.f32 %v785_v15, %v706_v14  ;;  %vm800_vm10 = vcmp.gt.f32.partialorder %v788_v13, 0.0  ;;  %v1099_v14 = vld [vmem:[%s1736_s6] sm:$0xff] }
 0x31b   : > { %v792_v18 = vmul.f32 1.442695, %v790_v16  ;;  %v791_v19 = vmin.f32 %v789_v17, 0.0  ;;  %vm801_vm11 = vcmp.gt.f32.partialorder %v789_v17, 0.0  ;;  %v1100_v16 = vld [vmem:[%s1736_s6 + $0x8] sm:$0xff] }
 0x31d   : > { %1461 = vpow2.f32 %v792_v18  ;;  %v794_v20 = vmul.f32 1.442695, %v791_v19  ;;  %v1102_v18 = vld [vmem:[%s1736_s6 + $0x18] sm:$0xff] }
 0x31f   : > { %1463 = vpow2.f32 %v794_v20 }
 0x32a   : > { %v1462_v21 = vpop.eup %1461 }
 0x32b   : > { %v1398_v22 = vadd.f32 -1.0, %v1462_v21 }
 0x32c   : > { %v1464_v23 = vpop.eup %1463 }
 0x32d   : > { %v798_v24 = vmul.f32 1.6732632, %v1398_v22  ;;  %v1399_v25 = vadd.f32 -1.0, %v1464_v23 }
 0x32f   : > { %v802_v26 = vsel %vm800_vm10, %v788_v13, %v798_v24  ;;  %v799_v27 = vmul.f32 1.6732632, %v1399_v25 }
 0x330   : > { %807 = vrot.lane.b32.xlu0 %v802_v26, %s1512_s19 }
 0x331   : > { %v803_v28 = vsel %vm801_vm11, %v789_v17, %v799_v27  ;;  %v1101_v17 = vld [vmem:[%s1736_s6 + $0x10] sm:$0xff] }
 0x332   : > { %809 = vrot.lane.b32.xlu1 %v803_v28, %s1512_s19  ;;  %894 = vmatprep.subr.mxu0 %v803_v28 }
 0x333   : > { %895 = vmatpush1.msra.mxu0 %v802_v26 }
 0x334   : > { %834 = vrot.lane.b32.xlu0 %v802_v26, %s1513_s22  ;;  %1400 = vmatmul.mubr.msk.f32.vlgmr.msra.gmra.mxu0 %vm397_vm3, %v805_v29 }
 0x335   : > { %1076 = vmatprep.mubr.f32.mxu0 %v1509_v4 }
 0x336   : > { %836 = vrot.lane.b32.xlu1 %v803_v28, %s1513_s22 }
 0x3a2   : > { %v808_v36 = vpop.permute.xlu0 %807 }
 0x3a4   : > { %v810_v42 = vpop.permute.xlu1 %809 }
 0x3a5   : > { %v812_v44 = vsel %vm811_vm12, %v808_v36, %v810_v42  ;;  %v813_v45 = vsel %vm811_vm12, %v810_v42, %v808_v36 }
 0x3a6   : > { %v832_v46 = vmul.f32 %v827_v37, %v813_v45  ;;  %v833_v48 = vmul.f32 %v831_v38, %v812_v44  ;;  %v835_v51 = vpop.permute.xlu0 %834 }
 0x3a8   : > { %v837_v52 = vpop.permute.xlu1 %836  ;;  %968 = vmatprep.subr.mxu1 %v833_v48 }
 0x3a9   : > { %v839_v53 = vsel %vm838_vm13, %v835_v51, %v837_v52  ;;  %v840_v54 = vsel %vm838_vm13, %v837_v52, %v835_v51  ;;  %969 = vmatpush1.msra.mxu1 %v832_v46 }
 0x3aa   : > { %v859_v43 = vmul.f32 %v854_v49, %v839_v53  ;;  %v860_v55 = vmul.f32 %v858_v50, %v840_v54  ;;  %1401 = vmatmul.mubr.msk.f32.vlgmr.msra.gmra.mxu1 %vm397_vm3, %v804_v41 }
 0x3ab   : > { %1179 = vmatprep.mubr.f32.mxu1 %v1509_v4 }
 0x3ac   : > { %1042 = vmatprep.subr.mxu0 %v860_v55 }
 0x3ad   : > { %1043 = vmatpush1.msra.mxu0 %v859_v43 }
 0x3ae   : > { %1402 = vmatmul.mubr.msk.f32.vlgmr.msra.gmra.mxu0 %vm397_vm3, %v806_v47 }
 0x3f4   : > { %v930_v56 = vpop.f32.mrf.mxu0 }
 0x3f6   : > { %v932_v58 = vpop.f32.mrf.mxu0 }
 0x46a   : > { %v1004_v57 = vpop.f32.mrf.mxu1 }
 0x46b   : > { %v1005_v60 = vadd.f32 %v1004_v57, %v930_v56 }
 0x46c   : > { %v1006_v59 = vpop.f32.mrf.mxu1 }
 0x46d   : > { %v1007_v62 = vadd.f32 %v1006_v59, %v932_v58 }
 0x46e   : > { %v1078_v61 = vpop.f32.mrf.mxu0 }
 0x46f   : > { %v1083_v63 = vadd.f32 %v1078_v61, %v1005_v60 }
 0x470   : > { %v1080_v0 = vpop.f32.mrf.mxu0 }
 0x471   : > { %v1085_v1 = vmin.f32 %v1083_v63, 0.0  ;;  %v1084_v2 = vadd.f32 %v1080_v0, %v1007_v62  ;;  %vm1095_vm15 = vcmp.gt.f32.partialorder %v1083_v63, 0.0 }
 0x473   : > { %v1087_v3 = vmul.f32 1.442695, %v1085_v1  ;;  %v1086_v5 = vmin.f32 %v1084_v2, 0.0  ;;  %vm1096_vm14 = vcmp.gt.f32.partialorder %v1084_v2, 0.0 }
 0x475   : > { %1465 = vpow2.f32 %v1087_v3  ;;  %v1089_v6 = vmul.f32 1.442695, %v1086_v5 }
 0x477   : > { %1467 = vpow2.f32 %v1089_v6 }
 0x482   : > { %v1466_v7 = vpop.eup %1465 }
 0x483   : > { %v1403_v8 = vadd.f32 -1.0, %v1466_v7 }
 0x484   : > { %v1468_v9 = vpop.eup %1467 }
 0x485   : > { %v1404_v10 = vadd.f32 -1.0, %v1468_v9  ;;  %v1093_v11 = vmul.f32 1.6732632, %v1403_v8 }
 0x487   : > { %v1094_v12 = vmul.f32 1.6732632, %v1404_v10  ;;  %v1097_v15 = vsel %vm1095_vm15, %v1083_v63, %v1093_v11 }
 0x489   : > { %v1098_v13 = vsel %vm1096_vm14, %v1084_v2, %v1094_v12 }
 0x48a   : > { %1145 = vmatprep.subr.mxu1 %v1098_v13 }
 0x48b   : > { %1146 = vmatpush1.msra.mxu1 %v1097_v15 }
 0x48c   : > { %1405 = vmatmul.mubr.msk.f32.vlgmr.msra.gmra.mxu1 %vm397_vm3, %v1099_v14 }
 0x48d   : > { %1185 = vmatprep.mubr.f32.mxu1 %v1509_v4 }
 0x490   : > { %1406 = vmatmul.mubr.msk.f32.gmra.mxu1 %vm397_vm3, %v1100_v16 }
 0x491   : > { %1191 = vmatprep.mubr.f32.mxu1 %v1509_v4 }
 0x494   : > { %1407 = vmatmul.mubr.msk.f32.gmra.mxu1 %vm397_vm3, %v1101_v17 }
 0x495   : > { %1197 = vmatprep.mubr.f32.mxu1 %v1509_v4 }
 0x498   : > { %1408 = vmatmul.mubr.msk.f32.gmra.mxu1 %vm397_vm3, %v1102_v18 }
 0x54c   : > { %v1181_v19 = vpop.f32.mrf.mxu1 }
 0x54d   : > { %v1204_v20 = vmin.f32 %v1181_v19, 0.0  ;;  %vm1244_vm0 = vcmp.gt.f32.partialorder %v1181_v19, 0.0 }
 0x54e   : > { %v1183_v21 = vpop.f32.mrf.mxu1 }
 0x54f   : > { %v1212_v22 = vmul.f32 1.442695, %v1204_v20  ;;  %v1205_v23 = vmin.f32 %v1183_v21, 0.0  ;;  %vm1245_vm1 = vcmp.gt.f32.partialorder %v1183_v21, 0.0 }
 0x550   : > { %v1187_v24 = vpop.f32.mrf.mxu1 }
 0x551   : > { %1469 = vpow2.f32 %v1212_v22  ;;  %v1214_v25 = vmul.f32 1.442695, %v1205_v23  ;;  %v1206_v26 = vmin.f32 %v1187_v24, 0.0  ;;  %vm1246_vm2 = vcmp.gt.f32.partialorder %v1187_v24, 0.0 }
 0x552   : > { %v1189_v27 = vpop.f32.mrf.mxu1 }
 0x553   : > { %1471 = vpow2.f32 %v1214_v25  ;;  %v1216_v28 = vmul.f32 1.442695, %v1206_v26  ;;  %v1207_v29 = vmin.f32 %v1189_v27, 0.0  ;;  %vm1247_vm3 = vcmp.gt.f32.partialorder %v1189_v27, 0.0 }
 0x554   : > { %v1193_v4 = vpop.f32.mrf.mxu1 }
 0x555   : > { %1473 = vpow2.f32 %v1216_v28  ;;  %v1218_v30 = vmul.f32 1.442695, %v1207_v29  ;;  %v1208_v31 = vmin.f32 %v1193_v4, 0.0  ;;  %vm1248_vm4 = vcmp.gt.f32.partialorder %v1193_v4, 0.0 }
 0x556   : > { %v1195_v32 = vpop.f32.mrf.mxu1 }
 0x557   : > { %1475 = vpow2.f32 %v1218_v30  ;;  %v1220_v33 = vmul.f32 1.442695, %v1208_v31  ;;  %v1209_v34 = vmin.f32 %v1195_v32, 0.0  ;;  %vm1249_vm5 = vcmp.gt.f32.partialorder %v1195_v32, 0.0 }
 0x558   : > { %v1199_v35 = vpop.f32.mrf.mxu1 }
 0x559   : > { %1477 = vpow2.f32 %v1220_v33  ;;  %v1222_v36 = vmul.f32 1.442695, %v1209_v34  ;;  %v1210_v37 = vmin.f32 %v1199_v35, 0.0  ;;  %vm1250_vm6 = vcmp.gt.f32.partialorder %v1199_v35, 0.0 }
 0x55a   : > { %v1201_v38 = vpop.f32.mrf.mxu1 }
 0x55b   : > { %1479 = vpow2.f32 %v1222_v36  ;;  %v1224_v39 = vmul.f32 1.442695, %v1210_v37  ;;  %v1211_v40 = vmin.f32 %v1201_v38, 0.0  ;;  %vm1251_vm7 = vcmp.gt.f32.partialorder %v1201_v38, 0.0 }
 0x55d   : > { %1481 = vpow2.f32 %v1224_v39  ;;  %v1226_v42 = vmul.f32 1.442695, %v1211_v40 }
 0x55e   : > { %v1470_v44 = vpop.eup %1469 }
 0x55f   : > { %v1409_v45 = vadd.f32 -1.0, %v1470_v44  ;;  %1483 = vpow2.f32 %v1226_v42 }
 0x560   : > { %v1472_v46 = vpop.eup %1471 }
 0x561   : > { %v1236_v48 = vmul.f32 1.6732632, %v1409_v45  ;;  %v1410_v49 = vadd.f32 -1.0, %v1472_v46 }
 0x562   : > { %v1474_v50 = vpop.eup %1473 }
 0x563   : > { %v1252_v41 = vsel %vm1244_vm0, %v1181_v19, %v1236_v48  ;;  %v1237_v51 = vmul.f32 1.6732632, %v1410_v49  ;;  %v1411_v52 = vadd.f32 -1.0, %v1474_v50 }
 0x564   : > { %v1476_v53 = vpop.eup %1475  ;;  %v1260_v54 = vmul.f32 1.050701, %v1252_v41 }
 0x565   : > { %v1253_v43 = vsel %vm1245_vm1, %v1183_v21, %v1237_v51  ;;  %v1238_v55 = vmul.f32 1.6732632, %v1411_v52  ;;  %v1412_v47 = vadd.f32 -1.0, %v1476_v53 }
 0x566   : > { %v1478_v56 = vpop.eup %1477  ;;  %1268 = vst [vmem:[%s1695_s21] sm:$0xff] %v1260_v54  ;;  %v1261_v57 = vmul.f32 1.050701, %v1253_v43 }
 0x567   : > { %v1254_v58 = vsel %vm1246_vm2, %v1187_v24, %v1238_v55  ;;  %v1239_v59 = vmul.f32 1.6732632, %v1412_v47  ;;  %v1413_v60 = vadd.f32 -1.0, %v1478_v56 }
 0x568   : > { %v1480_v61 = vpop.eup %1479  ;;  %1269 = vst [vmem:[%s1695_s21 + $0x8] sm:$0xff] %v1261_v57  ;;  %v1262_v62 = vmul.f32 1.050701, %v1254_v58 }
 0x569   : > { %v1255_v63 = vsel %vm1247_vm3, %v1189_v27, %v1239_v59  ;;  %v1240_v0 = vmul.f32 1.6732632, %v1413_v60  ;;  %v1414_v1 = vadd.f32 -1.0, %v1480_v61 }
 0x56a   : > { %v1482_v2 = vpop.eup %1481  ;;  %1270 = vst [vmem:[%s1695_s21 + $0x10] sm:$0xff] %v1262_v62  ;;  %v1263_v3 = vmul.f32 1.050701, %v1255_v63 }
 0x56b   : > { %v1256_v5 = vsel %vm1248_vm4, %v1193_v4, %v1240_v0  ;;  %v1241_v6 = vmul.f32 1.6732632, %v1414_v1  ;;  %v1415_v7 = vadd.f32 -1.0, %v1482_v2 }
 0x56c   : > { %v1484_v8 = vpop.eup %1483  ;;  %1271 = vst [vmem:[%s1695_s21 + $0x18] sm:$0xff] %v1263_v3  ;;  %v1264_v9 = vmul.f32 1.050701, %v1256_v5 }
 0x56d   : > { %v1257_v10 = vsel %vm1249_vm5, %v1195_v32, %v1241_v6  ;;  %v1242_v11 = vmul.f32 1.6732632, %v1415_v7  ;;  %v1416_v12 = vadd.f32 -1.0, %v1484_v8  ;;  %v1298_v19 = vld [vmem:[%s1695_s21] sm:$0xff] (%p1584_p5) }
 0x56e   : > { %1272 = vst [vmem:[%s1695_s21 + $0x20] sm:$0xff] %v1264_v9  ;;  %v1265_v13 = vmul.f32 1.050701, %v1257_v10  ;;  %1299 = vst [vmem:[%s1285_s23] sm:$0xff] (%p1584_p5), %v1298_v19 }
 0x56f   : > { %v1258_v14 = vsel %vm1250_vm6, %v1199_v35, %v1242_v11  ;;  %v1243_v15 = vmul.f32 1.6732632, %v1416_v12  ;;  %v1300_v20 = vld [vmem:[%s1695_s21 + $0x8] sm:$0xff] (%p1584_p5) }
 0x570   : > { %1273 = vst [vmem:[%s1695_s21 + $0x28] sm:$0xff] %v1265_v13  ;;  %v1266_v16 = vmul.f32 1.050701, %v1258_v14  ;;  %1282 = sbr.rel (!%p1584_p5) target bundleno = 1405 (0x57d), region = 75  ;;  %1301 = vst [vmem:[%s1285_s23 + $0x8] sm:$0xff] (%p1584_p5), %v1300_v20 }
 0x571   : > { %v1259_v17 = vsel %vm1251_vm7, %v1201_v38, %v1243_v15  ;;  %v1302_v21 = vld [vmem:[%s1695_s21 + $0x10] sm:$0xff] (%p1584_p5) }
 0x572   : > { %1274 = vst [vmem:[%s1695_s21 + $0x30] sm:$0xff] %v1266_v16  ;;  %v1267_v18 = vmul.f32 1.050701, %v1259_v17  ;;  %1303 = vst [vmem:[%s1285_s23 + $0x20] sm:$0xff] (%p1584_p5), %v1302_v21 }
 0x573   : > { %v1304_v22 = vld [vmem:[%s1695_s21 + $0x18] sm:$0xff] (%p1584_p5) }
 0x574   : > { %1275 = vst [vmem:[%s1695_s21 + $0x38] sm:$0xff] %v1267_v18  ;;  %1305 = vst [vmem:[%s1285_s23 + $0x28] sm:$0xff] (%p1584_p5), %v1304_v22 }
 0x575   : > { %v1306_v23 = vld [vmem:[%s1695_s21 + $0x20] sm:$0xff] }
 0x576   : > { %1307 = vst [vmem:[%s1285_s23 + $0x40] sm:$0xff] %v1306_v23 }
 0x577   : > { %v1308_v24 = vld [vmem:[%s1695_s21 + $0x28] sm:$0xff] }
 0x578   : > { %1309 = vst [vmem:[%s1285_s23 + $0x48] sm:$0xff] %v1308_v24 }
 0x579   : > { %v1310_v25 = vld [vmem:[%s1695_s21 + $0x30] sm:$0xff] }
 0x57a   : > { %1311 = vst [vmem:[%s1285_s23 + $0x60] sm:$0xff] %v1310_v25 }
 0x57b   : > { %v1312_v26 = vld [vmem:[%s1695_s21 + $0x38] sm:$0xff] }
 0x57c   : > { %1313 = vst [vmem:[%s1285_s23 + $0x68] sm:$0xff] %v1312_v26 }
 0x57d PF: > { %p14_p10 = scmp.ge.s32.totalorder %s1571_s28, 4   ;;  %s1739_s24 = smov %s1503_s25 }
 0x57e   : > { %s1740_s25 = smov %s1582_s8  ;;  %s1741_s26 = smov %s1571_s28 }
 0x57f   :  { %16 = sbr.rel (!%p14_p10) target bundleno = 2 (0x2), region = 129 }

</bundles_post_ra>
